<compile_context>
chip_gen: v6e
topology: v6e:2x2x1
jax: 0.10.0
libtpu: 0.0.40
codegen_flags: <defaults>
</compile_context>

<pallas_src>
import jax
import jax.numpy as jnp
from jax.experimental import pallas as pl
from jax.experimental.pallas import tpu as pltpu


def _cdiv(a: int, b: int) -> int:
    return -(-a // b)


def _round_up(a: int, m: int) -> int:
    return _cdiv(a, m) * m


def _make_ce_label_smooth_kernel(num_classes: int, epsilon: float,
                                 n_total: int, tile_rows: int):
    uni = float(epsilon) / float(num_classes)
    w_tgt = (1.0 - float(epsilon)) + uni   # weight at the target class

    def kernel(x_ref, t_ref, out_ref):
        # x_ref: (TN, C) logits (native dtype) ; t_ref: (TN, 1) int32 labels.
        x_raw = x_ref[...]
        tn, c = x_raw.shape
        t = t_ref[...]                                              # (TN, 1)

        # Row max on the native dtype (exact even in bf16), then upcast once.
        m = jnp.max(x_raw, axis=1, keepdims=True).astype(jnp.float32)   # (TN, 1)
        shifted = x_raw.astype(jnp.float32) - m                          # (TN, C) f32
        lse = jnp.log(jnp.sum(jnp.exp(shifted), axis=1, keepdims=True))  # (TN, 1)

        # (1, C) class-id vector broadcast against (TN, 1) targets inside the
        # compare: no full (TN, C) int32 iota temporary.
        cls_ids = jax.lax.broadcasted_iota(jnp.int32, (1, c), 1)
        w = jnp.where(cls_ids == t, w_tgt, uni)                     # (TN, C) f32

        # Single fused class-axis reduction.
        row_loss = lse - jnp.sum(w * shifted, axis=1, keepdims=True)     # (TN, 1)

        # Mask rows past the global batch size (ragged last tile / OOB padding)
        # BEFORE any cross-row mixing, so padded garbage (even NaN) cannot leak.
        row_idx = (pl.program_id(0) * tile_rows
                   + jax.lax.broadcasted_iota(jnp.int32, (tn, 1), 0))
        row_loss = jnp.where(row_idx < n_total, row_loss, 0.0)

        # Per-tile partial sum, broadcast into a lane-dense (8, 128) block so
        # every grid step writes an independent, unmasked output block.
        partial = jnp.sum(row_loss, axis=0, keepdims=True)          # (1, 1)
        out_ref[...] = jnp.broadcast_to(partial, (8, 128))

    return kernel


def _vmem_limit_bytes() -> int:
    """Generation-aware VMEM limit (leaves headroom below physical capacity)."""
    try:
        cap = int(pltpu.get_tpu_info().vmem_capacity_bytes)
    except Exception:
        cap = 64 * 1024 * 1024   # conservative fallback (v7x per-TC size)
    # ~75% of capacity, capped: ~48 MiB on v7x (64 MiB), ~96 MiB on v5e/v6e (128 MiB).
    return min((cap * 3) // 4, 96 * 1024 * 1024)


def _choose_tile_rows(n: int, c: int, itemsize: int, *,
                      vmem_budget_bytes: int,
                      max_tile_rows: int = 4096,
                      min_tiles: int = 2) -> int:
    """Largest multiple-of-8 row tile whose full working set fits the budget,
    while leaving the megacore 'parallel' axis at least `min_tiles` steps."""
    # Per-row VMEM footprint:
    #  * 2x double-buffered DMA: logits row (c*itemsize) + lane-padded label row (128*4)
    #  * in-kernel f32 temporaries (upcast copy, exp, weights, products): ~12 B/elem
    per_row_bytes = 2 * (c * itemsize + 512) + 12 * c + 64
    tn = vmem_budget_bytes // max(per_row_bytes, 1)
    tn = min(tn, max_tile_rows)

    # Give the parallel grid axis work for both v7x TensorCores when possible.
    if n >= 8 * min_tiles:
        tn = min(tn, _round_up(_cdiv(n, min_tiles), 8))

    tn = min(tn, _round_up(n, 8))
    tn = max(8, (tn // 8) * 8)

    if per_row_bytes * tn > vmem_budget_bytes and tn == 8:
        # TODO(synk): class-dim grid axis + online logsumexp for huge C.
        raise ValueError(
            f"num_classes={c} too large for a single (tile_rows, C) VMEM block; "
            "class-dimension blocking not implemented.")
    return int(tn)


def cross_entropy_label_smooth(inputs, targets, num_classes: int, epsilon: float,
                               *, tile_rows: int | None = None):
    """inputs: (N, C) float logits; targets: (N,) int labels. Returns scalar f32 loss."""
    n, c = inputs.shape
    assert c == num_classes
    t2d = targets.astype(jnp.int32).reshape(n, 1)

    vmem_limit = _vmem_limit_bytes()
    if tile_rows is None:
        tile_rows = _choose_tile_rows(
            n, c, jnp.dtype(inputs.dtype).itemsize,
            vmem_budget_bytes=int(vmem_limit * 0.85))
    assert tile_rows % 8 == 0
    num_tiles = _cdiv(n, tile_rows)

    kernel = _make_ce_label_smooth_kernel(num_classes, float(epsilon), n, tile_rows)

    partials = pl.pallas_call(
        kernel,
        out_shape=jax.ShapeDtypeStruct((num_tiles * 8, 128), jnp.float32),
        grid=(num_tiles,),
        in_specs=[
            pl.BlockSpec((tile_rows, c), lambda i: (i, 0)),   # logits row tile
            pl.BlockSpec((tile_rows, 1), lambda i: (i, 0)),   # labels row tile
        ],
        out_specs=pl.BlockSpec((8, 128), lambda i: (i, 0)),   # per-tile partial block
        compiler_params=pltpu.CompilerParams(
            dimension_semantics=("parallel",),
            vmem_limit_bytes=int(vmem_limit),
        ),
    )(inputs, t2d)

    # Each tile's partial is replicated across its (8, 128) block; take one copy.
    # Divide by the *global* N exactly once, outside the grid.
    return jnp.sum(partials[::8, 0]) / jnp.float32(n)


def _reference(inputs, targets, num_classes, epsilon):
    log_probs = jax.nn.log_softmax(inputs.astype(jnp.float32), axis=1)
    onehot = jax.nn.one_hot(targets, num_classes, dtype=jnp.float32)
    smooth = (1.0 - epsilon) * onehot + epsilon / num_classes
    return (-smooth * log_probs).mean(0).sum()


if __name__ == "__main__":
    key = jax.random.PRNGKey(0)
    k1, k2, k3, k4 = jax.random.split(key, 4)
    epsilon = 0.1

    # Test 1: tiny shapes matching the module spec (single tile, small C).
    num_classes, batch = 16, 8
    x1 = jax.random.normal(k1, (batch, num_classes), dtype=jnp.float32)
    t1 = jax.random.randint(k2, (batch,), 0, num_classes, dtype=jnp.int32)
    loss1 = jax.block_until_ready(
        cross_entropy_label_smooth(x1, t1, num_classes, epsilon))
    ref1 = _reference(x1, t1, num_classes, epsilon)
    assert jnp.allclose(loss1, ref1, atol=1e-5, rtol=1e-5), (loss1, ref1)

    # Test 2: auto tile chooser, multi-tile grid with a ragged last tile,
    # bf16 logits kept bf16 through the DMA (upcast happens inside the kernel).
    num_classes2, batch2 = 1000, 300
    x2 = jax.random.normal(k3, (batch2, num_classes2), dtype=jnp.float32)
    x2 = x2.astype(jnp.bfloat16)
    t2 = jax.random.randint(k4, (batch2,), 0, num_classes2, dtype=jnp.int32)
    loss2 = jax.block_until_ready(
        cross_entropy_label_smooth(x2, t2, num_classes2, epsilon))
    ref2 = _reference(x2.astype(jnp.float32), t2, num_classes2, epsilon)
    assert jnp.allclose(loss2, ref2, atol=1e-4, rtol=1e-4), (loss2, ref2)

    # Test 3: explicit small tile -> 3-step grid, f32 logits.
    x3 = x2.astype(jnp.float32)
    loss3 = jax.block_until_ready(
        cross_entropy_label_smooth(x3, t2, num_classes2, epsilon, tile_rows=128))
    ref3 = _reference(x3, t2, num_classes2, epsilon)
    assert jnp.allclose(loss3, ref3, atol=1e-5, rtol=1e-5), (loss3, ref3)

    print("KERNEL_OK")
</pallas_src>

<mosaic_0001>
module attributes {stable_mosaic.version = 11 : i64} {
  func.func @kernel(%arg0: i32, %arg1: memref<8x16xf32, #tpu.memory_space<vmem>>, %arg2: memref<8x1xi32, #tpu.memory_space<vmem>>, %arg3: memref<8x128xf32, #tpu.memory_space<vmem>>) attributes {dimension_semantics = [#tpu.dimension_semantics<parallel>], iteration_bounds = array<i64: 1>, scalar_prefetch = 0 : i64, scratch_operands = 0 : i64, tpu.core_type = #tpu.core_type<tc>, window_params = [{transform_indices = @transform_0, window_bounds = array<i64: 8, 16>}, {transform_indices = @transform_1, window_bounds = array<i64: 8, 1>}, {transform_indices = @transform_2, window_bounds = array<i64: 8, 128>}]} {
    %c0 = arith.constant 0 : index
    %c0_0 = arith.constant 0 : index
    %0 = vector.load %arg1[%c0, %c0_0] : memref<8x16xf32, #tpu.memory_space<vmem>>, vector<8x16xf32>
    %c0_1 = arith.constant 0 : index
    %c0_2 = arith.constant 0 : index
    %1 = vector.load %arg2[%c0_1, %c0_2] : memref<8x1xi32, #tpu.memory_space<vmem>>, vector<8x1xi32>
    %cst = arith.constant dense<0xFF800000> : vector<8xf32>
    %2 = vector.multi_reduction <maximumf>, %0, %cst [1] : vector<8x16xf32> to vector<8xf32>
    %3 = vector.shape_cast %2 : vector<8xf32> to vector<8x1xf32>
    %4 = vector.broadcast %3 : vector<8x1xf32> to vector<8x16xf32>
    %5 = arith.subf %0, %4 : vector<8x16xf32>
    %6 = math.exp %5 : vector<8x16xf32>
    %cst_3 = arith.constant dense<0.000000e+00> : vector<8xf32>
    %7 = vector.multi_reduction <add>, %6, %cst_3 [1] : vector<8x16xf32> to vector<8xf32>
    %8 = vector.shape_cast %7 : vector<8xf32> to vector<8x1xf32>
    %9 = math.log %8 : vector<8x1xf32>
    %10 = tpu.iota {dimensions = array<i32: 1>} : vector<1x16xi32>
    %11 = vector.broadcast %10 : vector<1x16xi32> to vector<8x16xi32>
    %12 = vector.broadcast %1 : vector<8x1xi32> to vector<8x16xi32>
    %13 = arith.cmpi eq, %11, %12 : vector<8x16xi32>
    %cst_4 = arith.constant 9.062500e-01 : f32
    %cst_5 = arith.constant 6.250000e-03 : f32
    %14 = vector.broadcast %cst_4 : f32 to vector<8x16xf32>
    %15 = vector.broadcast %cst_5 : f32 to vector<8x16xf32>
    %16 = arith.select %13, %14, %15 : vector<8x16xi1>, vector<8x16xf32>
    %17 = arith.mulf %16, %5 : vector<8x16xf32>
    %cst_6 = arith.constant dense<0.000000e+00> : vector<8xf32>
    %18 = vector.multi_reduction <add>, %17, %cst_6 [1] : vector<8x16xf32> to vector<8xf32>
    %19 = vector.shape_cast %18 : vector<8xf32> to vector<8x1xf32>
    %20 = arith.subf %9, %19 : vector<8x1xf32>
    %c8_i32 = arith.constant 8 : i32
    %21 = arith.muli %arg0, %c8_i32 : i32
    %22 = tpu.iota {dimensions = array<i32: 0>} : vector<8x1xi32>
    %23 = vector.broadcast %21 : i32 to vector<8x1xi32>
    %24 = arith.addi %23, %22 : vector<8x1xi32>
    %c8_i32_7 = arith.constant 8 : i32
    %25 = vector.broadcast %c8_i32_7 : i32 to vector<8x1xi32>
    %26 = arith.cmpi slt, %24, %25 : vector<8x1xi32>
    %cst_8 = arith.constant 0.000000e+00 : f32
    %27 = vector.broadcast %cst_8 : f32 to vector<8x1xf32>
    %28 = arith.select %26, %20, %27 : vector<8x1xi1>, vector<8x1xf32>
    %cst_9 = arith.constant dense<0.000000e+00> : vector<1xf32>
    %29 = vector.multi_reduction <add>, %28, %cst_9 [0] : vector<8x1xf32> to vector<1xf32>
    %30 = vector.shape_cast %29 : vector<1xf32> to vector<1x1xf32>
    %31 = vector.shape_cast %30 : vector<1x1xf32> to vector<1x1xf32>
    %32 = vector.broadcast %31 : vector<1x1xf32> to vector<8x128xf32>
    %c0_10 = arith.constant 0 : index
    %c0_11 = arith.constant 0 : index
    %33 = vector.load %arg3[%c0_10, %c0_11] : memref<8x128xf32, #tpu.memory_space<vmem>>, vector<8x128xf32>
    tpu.vector_store %arg3[%c0_10, %c0_11], %32 {strides = array<i32>} : memref<8x128xf32, #tpu.memory_space<vmem>>, vector<8x128xf32>,
    return
  }
  func.func @transform_0(%arg0: i32) -> (i32, i32) {
    %c0_i32 = arith.constant 0 : i32
    %c0_i32_0 = arith.constant 0 : i32
    return %arg0, %c0_i32 : i32, i32
  }
  func.func @transform_1(%arg0: i32) -> (i32, i32) {
    %c0_i32 = arith.constant 0 : i32
    %c0_i32_0 = arith.constant 0 : i32
    return %arg0, %c0_i32 : i32, i32
  }
  func.func @transform_2(%arg0: i32) -> (i32, i32) {
    %c0_i32 = arith.constant 0 : i32
    %c0_i32_0 = arith.constant 0 : i32
    return %arg0, %c0_i32 : i32, i32
  }
}

</mosaic_0001>

<bundles_post_ra>
// kernel: tpu_custom_call.1
= control target key start
LH: loop header
LB: loop body
LE: loop exit
PB: predicated region body
PF: predicated region fallthrough
CT: control target
= control target key end

     0   :  { %vm14_vm0 = vcmask 130048   ;;  %s126_s0 = inlined_call_operand.vmem [shape: f32[8,16], index: 0, kind: input, shape index: {}]   ;;  %s127_s1 = inlined_call_operand.vmem [shape: s32[8,1], index: 1, kind: input, shape index: {}]   ;;  %s128_s2 = inlined_call_operand.hbm [shape: f32[8,128], index: 2, kind: output, shape index: {}]  }
   0x1   :  { %v12_v0 = vld [vmem:[%s126_s0] sm:$0xff] }
   0x2   :  { %7 = vsyncpa [#allocation3], 0  ;;  %v15_v1 = vsel %vm14_vm0, %v12_v0, -inf  ;;  %v96_v2 = vmov 0   ;;  %v13_v3 = vld [vmem:[%s127_s1] sm:$0xff]  ;;  %v26_v7 = vlaneseq  ;;  %s98_s0 = smov [#allocation2]  }
   0x3   :  { %69 = vset.pattern.permute.xlu0 %v96_v2  ;;  %v97_v10 = vmov 0.00625   ;;  %s58_s1 = sshll.u32 %s98_s0, 4  ;;  %s59_s1 = int_to_ptr.vmem [resolvable:$true] %s58_s1 }
   0x4   :  { %16 = vmax.xlane.f32.xlu0 %v15_v1  ;;  %v27_v8 = vand.u32 127, %v26_v7  ;;  %s74_s13 = scalar_lea.vmem %s59_s1, 128  ;;  %p79_p1 = scmp.lt.s32.totalorder %s59_s1, %s59_s1 }
   0x5   :  { %p75_p0 = scmp.ne.s32.totalorder %s59_s1, %s74_s13  ;;  %p80_p2 = scmp.lt.s32.totalorder %s74_s13, %s74_s13 }
   0x7   :  { %p81_p3 = por %p80_p2, %p79_p1 }
   0x9   :  { %p82_p4 = pnand %p81_p3, %p75_p0 }
  0x1a   :  { %29 = vperm.xlu0 %69, %v13_v3  }
  0x8d   :  { %v17_v4 = vpop.xlane.xlu0 %16 }
  0x8e   :  { %v18_v5 = vsub.f32 %v12_v0, %v17_v4 }
  0x90   :  { %v19_v6 = vmul.f32 1.442695, %v18_v5 }
  0x92   :  { %70 = vpow2.f32 %v19_v6 }
  0x95   :  { %v30_v9 = vpop.permute.xlu0 %29 }
  0x96   :  { %vm31_vm1 = vcmp.eq.s32.totalorder %v27_v8, %v30_v9 }
  0x97   :  { %v32_v11 = vsel %vm31_vm1, 0.90625, %v97_v10 }
  0x98   :  { %v33_v14 = vmul.f32 %v32_v11, %v18_v5 }
  0x9a   :  { %v34_v15 = vsel %vm14_vm0, %v33_v14, 0.0 }
  0x9f   :  { %v71_v12 = vpop.eup %70 }
  0xa0   :  { %v21_v13 = vsel %vm14_vm0, %v71_v12, 0.0 }
  0xa1   :  { %22 = vadd.xlane.f32.xlu1 %v21_v13 }
  0xa5   :  { %35 = vadd.xlane.f32.xlu1 %v34_v15 }
 0x12a   :  { %v23_v16 = vpop.xlane.xlu1 %22 }
 0x12b   :  { %72 = vlog2.f32 %v23_v16 }
 0x12e   :  { %v36_v19 = vpop.xlane.xlu1 %35 }
 0x138   :  { %v73_v17 = vpop.eup %72 }
 0x139   :  { %v25_v18 = vmul.f32 0.6931472, %v73_v17 }
 0x13b   :  { %v37_v20 = vsub.f32 %v25_v18, %v36_v19 }
 0x13d   :  { %v45_v21 = vrot.slane %v37_v20, 4 }
 0x13f   :  { %v46_v22 = vadd.f32 %v45_v21, %v37_v20 }
 0x141   :  { %v47_v23 = vrot.slane %v46_v22, 2 }
 0x143   :  { %v48_v24 = vadd.f32 %v47_v23, %v46_v22 }
 0x145   :  { %v49_v25 = vrot.slane %v48_v24, 1 }
 0x147   :  { %v50_v26 = vadd.f32 %v49_v25, %v48_v24 }
 0x149   :  { %51 = vst [vmem:[#allocation2] sm:$0xff] %v50_v26 }
 0x14a   :  { %85 = shalt.err (!%p82_p4)
}
 0x14b   :  { %61 = dma.vmem_to_hbm [thread:$0]  %s59_s1, 128, %s128_s2, [#allocation3]  }
 0x14c   :  { %94 = dma.done.wait [#allocation3], 128  }
 0x14d   :  { %95 = vsyncadd [#allocation3], 4294967168 }
 0x14e   :  { %65 = vsyncpa [#allocation3], 1 }

</bundles_post_ra>
